<compile_context>
chip_gen: v7x
topology: tpu7x:2x2x1
jax: 0.10.0
libtpu: 0.0.40
codegen_flags: <defaults>
</compile_context>

<pallas_src>
import jax
import jax.numpy as jnp
from jax import lax
from jax.experimental import pallas as pl
from jax.experimental.pallas import tpu as pltpu

LANES = 128


def _round_up(x, m=8):
    return (x + m - 1) // m * m


# ---------------------------------------------------------------------------
# Fused kernel: embedding renorm + gather, wavefront-fused 2-layer RNN,
# classifier. Built as a closure over the static sizes.
# ---------------------------------------------------------------------------
def _make_kernel(T, Bp, VP, D, H):
    H2 = 2 * H
    TB = T * Bp
    r_emb = 0
    r_wih = r_emb + VP
    r_wbig = r_wih + _round_up(D)
    r_wc = r_wbig + _round_up(H2)
    r_bias = r_wc + _round_up(H2)

    def kernel(tok_ref, w_ref, out_ref):
        # ---- static, 8-row-aligned slab slices (no runtime indexing cost) ----
        emb = w_ref[r_emb:r_emb + VP, 0:D]          # (VP, D)   raw embedding (zero-padded rows)
        wih = w_ref[r_wih:r_wih + D, 0:H2]          # (D, 2H)   [Wih0 | 0]
        w_big = w_ref[r_wbig:r_wbig + H2, 0:H2]     # (2H, 2H)  [[Whh0, Wih1], [0, Whh1]]
        wc_big = w_ref[r_wc:r_wc + H2, :]           # (2H, 128) rows [H:2H, 0:2] = Wcls^T
        b01 = w_ref[r_bias:r_bias + 1, 0:H2]        # (1, 2H)   [b_ih0+b_hh0 | b_ih1+b_hh1]
        bc = w_ref[r_bias + 1:r_bias + 2, :]        # (1, 128)  classifier bias (lanes 0:2)

        # ---- Embedding max_norm=1 renorm of the table + one-hot-matmul gather ----
        sq = jnp.sum(emb * emb, axis=-1, keepdims=True)
        norm = jnp.sqrt(sq)
        scale = jnp.where(norm > 1.0, 1.0 / (norm + 1e-7), 1.0)
        emb_n = emb * scale                          # zero rows stay zero (norm=0 -> scale=1)

        onehot = (tok_ref[...] ==
                  lax.broadcasted_iota(jnp.int32, (TB, VP), 1)).astype(jnp.float32)
        x = jnp.dot(onehot, emb_n, preferred_element_type=jnp.float32)      # (TB, D)

        # ---- batched layer-0 input projection (+ per-step layer-1 bias in 2nd half) ----
        inj = jnp.dot(x, wih, preferred_element_type=jnp.float32) + b01     # (TB, 2H)

        # ---- wavefront-fused recurrence; state c = [h0[s], h1[s-1]] lives in vregs ----
        lane = lax.broadcasted_iota(jnp.int32, (Bp, H2), 1)
        c = jnp.where(lane < H, jnp.tanh(inj[0:Bp, :]), 0.0)   # [h0[0], h1[-1]=0]

        cs = []
        for s in range(1, T + 1):                    # fully unrolled static loop
            rec = jnp.dot(c, w_big, preferred_element_type=jnp.float32)     # (Bp, 2H)
            blk = s if s < T else 0                  # first half is unused at s == T
            c = jnp.tanh(rec + inj[blk * Bp:(blk + 1) * Bp, :])
            cs.append(c)                             # second half = h1[s-1]

        c_all = jnp.concatenate(cs, axis=0)          # (T*Bp, 2H): block t -> [.., h1[t]]

        # ---- classifier: one lane-dense matmul + one unmasked full-lane store ----
        logits = jnp.dot(c_all, wc_big, preferred_element_type=jnp.float32) + bc
        out_ref[...] = logits                        # (T*Bp, 128); lanes 0:2 are the logits

    return kernel


# ---------------------------------------------------------------------------
# Wrapper: packs weights into one slab, calls the kernel once, unpads output.
# Jitted so the packing / unpack glue fuses into very few XLA launches.
# ---------------------------------------------------------------------------
@jax.jit
def torch_model_forward(tokens, params):
    """Forward pass equivalent to TorchModel.forward(x) (no labels -> logits (B, T, 2))."""
    emb = params["embed"].astype(jnp.float32)
    V1, D = emb.shape
    H = params["w_hh0"].shape[0]
    H2 = 2 * H
    B, T = tokens.shape
    Bp = _round_up(max(B, 8))
    VP = _round_up(V1)
    assert H2 <= LANES and D <= LANES

    # slab row offsets (all multiples of 8)
    r_wih = VP
    r_wbig = r_wih + _round_up(D)
    r_wc = r_wbig + _round_up(H2)
    r_bias = r_wc + _round_up(H2)
    rows = r_bias + 8

    slab = jnp.zeros((rows, LANES), jnp.float32)
    slab = slab.at[0:V1, 0:D].set(emb)
    slab = slab.at[r_wih:r_wih + D, 0:H].set(params["w_ih0"].T)
    slab = slab.at[r_wbig:r_wbig + H, 0:H].set(params["w_hh0"].T)
    slab = slab.at[r_wbig:r_wbig + H, H:H2].set(params["w_ih1"].T)
    slab = slab.at[r_wbig + H:r_wbig + H2, H:H2].set(params["w_hh1"].T)
    slab = slab.at[r_wc + H:r_wc + H2, 0:2].set(params["w_cls"].T)
    slab = slab.at[r_bias, 0:H].set(params["b_ih0"] + params["b_hh0"])
    slab = slab.at[r_bias, H:H2].set(params["b_ih1"] + params["b_hh1"])
    slab = slab.at[r_bias + 1, 0:2].set(params["b_cls"])

    # time-major, batch-padded token ids (padded rows read row 0; sliced off below)
    tok_tm = jnp.zeros((T, Bp), jnp.int32).at[:, :B].set(tokens.T.astype(jnp.int32))
    tok_tm = tok_tm.reshape(T * Bp, 1)

    kernel = _make_kernel(T, Bp, VP, D, H)
    out = pl.pallas_call(
        kernel,
        out_shape=jax.ShapeDtypeStruct((T * Bp, LANES), jnp.float32),
        in_specs=[pl.BlockSpec(memory_space=pltpu.MemorySpace.VMEM),
                  pl.BlockSpec(memory_space=pltpu.MemorySpace.VMEM)],
        out_specs=pl.BlockSpec(memory_space=pltpu.MemorySpace.VMEM),
    )(tok_tm, slab)

    # lane-dense kernel output -> (B, T, 2) batch-first logits (fused under jit)
    out = out.reshape(T, Bp, LANES)[:, :B, :2]
    return jnp.transpose(out, (1, 0, 2))


# ---------------------------------------------------------------------------
# Pure-JAX reference (mirrors torch.nn.RNN semantics) for the sanity check.
# ---------------------------------------------------------------------------
@jax.jit
def reference_forward(tokens, params):
    emb = params["embed"]
    xe = emb[tokens]
    norm = jnp.sqrt(jnp.sum(xe * xe, axis=-1, keepdims=True))
    scale = jnp.where(norm > 1.0, 1.0 / (norm + 1e-7), 1.0)
    x = (xe * scale).astype(jnp.float32)             # (B, T, D)

    def run_layer(x_seq, w_ih, w_hh, b_ih, b_hh):
        B = x_seq.shape[0]
        H = w_hh.shape[0]
        h0 = jnp.zeros((B, H), jnp.float32)

        def step(h, xt):
            h = jnp.tanh(xt @ w_ih.T + b_ih + h @ w_hh.T + b_hh)
            return h, h

        _, ys = lax.scan(step, h0, jnp.transpose(x_seq, (1, 0, 2)))
        return jnp.transpose(ys, (1, 0, 2))

    x = run_layer(x, params["w_ih0"], params["w_hh0"], params["b_ih0"], params["b_hh0"])
    x = run_layer(x, params["w_ih1"], params["w_hh1"], params["b_ih1"], params["b_hh1"])
    return x @ params["w_cls"].T + params["b_cls"]


def init_params(key, vocab_size, input_size, hidden_size):
    keys = jax.random.split(key, 12)
    k_rnn = 1.0 / jnp.sqrt(hidden_size)
    k_cls = 1.0 / jnp.sqrt(hidden_size)
    u = lambda k, shape, bound: jax.random.uniform(k, shape, jnp.float32, -bound, bound)
    return {
        "embed": jax.random.normal(keys[0], (vocab_size + 1, input_size), jnp.float32),
        "w_ih0": u(keys[1], (hidden_size, input_size), k_rnn),
        "w_hh0": u(keys[2], (hidden_size, hidden_size), k_rnn),
        "b_ih0": u(keys[3], (hidden_size,), k_rnn),
        "b_hh0": u(keys[4], (hidden_size,), k_rnn),
        "w_ih1": u(keys[5], (hidden_size, hidden_size), k_rnn),
        "w_hh1": u(keys[6], (hidden_size, hidden_size), k_rnn),
        "b_ih1": u(keys[7], (hidden_size,), k_rnn),
        "b_hh1": u(keys[8], (hidden_size,), k_rnn),
        "w_cls": u(keys[9], (2, hidden_size), k_cls),
        "b_cls": u(keys[10], (2,), k_cls),
    }


if __name__ == "__main__":
    # Small shapes consistent with the module: batch=2, seq=8, input=32, hidden=32,
    # vocab=20, 2 RNN layers.
    vocab_size, input_size, hidden_size = 20, 32, 32
    batch, seq_len = 2, 8

    key = jax.random.PRNGKey(0)
    k_params, k_tokens = jax.random.split(key)
    params = init_params(k_params, vocab_size, input_size, hidden_size)
    tokens = jax.random.randint(k_tokens, (batch, seq_len), 0, vocab_size + 1, dtype=jnp.int32)

    logits = jax.block_until_ready(torch_model_forward(tokens, params))
    assert logits.shape == (batch, seq_len, 2), logits.shape

    ref = jax.block_until_ready(reference_forward(tokens, params))
    max_err = float(jnp.max(jnp.abs(logits - ref)))
    assert jnp.allclose(logits, ref, rtol=1e-3, atol=1e-3), max_err

    # TODO(synk): CrossEntropyLoss branch (forward with labels) is training-only glue; not ported.
    # TODO(synk): torch's max_norm mutates embedding weights in place across calls; this is the
    #             stateless single-forward equivalent. bf16 MXU operands (v6e/v7x) left out to
    #             preserve the 1e-3 tolerance.
    print("KERNEL_OK")
</pallas_src>

<mosaic_0001>
module attributes {stable_mosaic.version = 11 : i64} {
  func.func @kernel(%arg0: memref<64x1xi32, #tpu.memory_space<vmem>>, %arg1: memref<192x128xf32, #tpu.memory_space<vmem>>, %arg2: memref<64x128xf32, #tpu.memory_space<vmem>>) attributes {dimension_semantics = [], scalar_prefetch = 0 : i64, scratch_operands = 0 : i64, tpu.core_type = #tpu.core_type<tc>} {
    %c0 = arith.constant 0 : index
    %c0_0 = arith.constant 0 : index
    %0 = vector.load %arg1[%c0, %c0_0] : memref<192x128xf32, #tpu.memory_space<vmem>>, vector<24x32xf32>
    %c24 = arith.constant 24 : index
    %c0_1 = arith.constant 0 : index
    %1 = vector.load %arg1[%c24, %c0_1] : memref<192x128xf32, #tpu.memory_space<vmem>>, vector<32x64xf32>
    %c56 = arith.constant 56 : index
    %c0_2 = arith.constant 0 : index
    %2 = vector.load %arg1[%c56, %c0_2] : memref<192x128xf32, #tpu.memory_space<vmem>>, vector<64x64xf32>
    %c120 = arith.constant 120 : index
    %c0_3 = arith.constant 0 : index
    %3 = vector.load %arg1[%c120, %c0_3] : memref<192x128xf32, #tpu.memory_space<vmem>>, vector<64x128xf32>
    %c184 = arith.constant 184 : index
    %c0_4 = arith.constant 0 : index
    %4 = vector.load %arg1[%c184, %c0_4] : memref<192x128xf32, #tpu.memory_space<vmem>>, vector<1x64xf32>
    %c185 = arith.constant 185 : index
    %c0_5 = arith.constant 0 : index
    %5 = vector.load %arg1[%c185, %c0_5] : memref<192x128xf32, #tpu.memory_space<vmem>>, vector<1x128xf32>
    %6 = arith.mulf %0, %0 : vector<24x32xf32>
    %cst = arith.constant dense<0.000000e+00> : vector<24xf32>
    %7 = vector.multi_reduction <add>, %6, %cst [1] : vector<24x32xf32> to vector<24xf32>
    %8 = vector.shape_cast %7 : vector<24xf32> to vector<24x1xf32>
    %9 = math.sqrt %8 : vector<24x1xf32>
    %cst_6 = arith.constant 1.000000e+00 : f32
    %10 = vector.broadcast %cst_6 : f32 to vector<24x1xf32>
    %11 = arith.cmpf ogt, %9, %10 : vector<24x1xf32>
    %cst_7 = arith.constant 1.000000e-07 : f32
    %12 = vector.broadcast %cst_7 : f32 to vector<24x1xf32>
    %13 = arith.addf %9, %12 : vector<24x1xf32>
    %cst_8 = arith.constant 1.000000e+00 : f32
    %14 = vector.broadcast %cst_8 : f32 to vector<24x1xf32>
    %15 = arith.divf %14, %13 : vector<24x1xf32>
    %cst_9 = arith.constant 1.000000e+00 : f32
    %16 = vector.broadcast %cst_9 : f32 to vector<24x1xf32>
    %17 = arith.select %11, %15, %16 : vector<24x1xi1>, vector<24x1xf32>
    %18 = vector.broadcast %17 : vector<24x1xf32> to vector<24x32xf32>
    %19 = arith.mulf %0, %18 : vector<24x32xf32>
    %c0_10 = arith.constant 0 : index
    %c0_11 = arith.constant 0 : index
    %20 = vector.load %arg0[%c0_10, %c0_11] : memref<64x1xi32, #tpu.memory_space<vmem>>, vector<64x1xi32>
    %21 = tpu.iota {dimensions = array<i32: 1>} : vector<64x24xi32>
    %22 = vector.broadcast %20 : vector<64x1xi32> to vector<64x24xi32>
    %23 = arith.cmpi eq, %22, %21 : vector<64x24xi32>
    %24 = arith.extui %23 : vector<64x24xi1> to vector<64x24xi32>
    %25 = arith.sitofp %24 : vector<64x24xi32> to vector<64x24xf32>
    %cst_12 = arith.constant dense<0.000000e+00> : vector<64x32xf32>
    %26 = tpu.matmul %25, %19, %cst_12 {dimension_numbers = #tpu.dot_dimension_numbers<[1], [0], [0], [1], [0, 0, 1, 1], [], []>} : vector<64x24xf32>, vector<24x32xf32>, vector<64x32xf32> -> vector<64x32xf32>
    %cst_13 = arith.constant dense<0.000000e+00> : vector<64x64xf32>
    %27 = tpu.matmul %26, %1, %cst_13 {dimension_numbers = #tpu.dot_dimension_numbers<[1], [0], [0], [1], [0, 0, 1, 1], [], []>} : vector<64x32xf32>, vector<32x64xf32>, vector<64x64xf32> -> vector<64x64xf32>
    %28 = vector.broadcast %4 : vector<1x64xf32> to vector<64x64xf32>
    %29 = arith.addf %27, %28 : vector<64x64xf32>
    %30 = tpu.iota {dimensions = array<i32: 1>} : vector<8x64xi32>
    %c32_i32 = arith.constant 32 : i32
    %31 = vector.broadcast %c32_i32 : i32 to vector<8x64xi32>
    %32 = arith.cmpi slt, %30, %31 : vector<8x64xi32>
    %33 = vector.extract_strided_slice %29 {offsets = [0, 0], sizes = [8, 64], strides = [1, 1]} : vector<64x64xf32> to vector<8x64xf32>
    %34 = math.tanh %33 : vector<8x64xf32>
    %cst_14 = arith.constant 0.000000e+00 : f32
    %35 = vector.broadcast %cst_14 : f32 to vector<8x64xf32>
    %36 = arith.select %32, %34, %35 : vector<8x64xi1>, vector<8x64xf32>
    %cst_15 = arith.constant dense<0.000000e+00> : vector<8x64xf32>
    %37 = tpu.matmul %36, %2, %cst_15 {dimension_numbers = #tpu.dot_dimension_numbers<[1], [0], [0], [1], [0, 0, 1, 1], [], []>} : vector<8x64xf32>, vector<64x64xf32>, vector<8x64xf32> -> vector<8x64xf32>
    %38 = vector.extract_strided_slice %29 {offsets = [8, 0], sizes = [8, 64], strides = [1, 1]} : vector<64x64xf32> to vector<8x64xf32>
    %39 = arith.addf %37, %38 : vector<8x64xf32>
    %40 = math.tanh %39 : vector<8x64xf32>
    %cst_16 = arith.constant dense<0.000000e+00> : vector<8x64xf32>
    %41 = tpu.matmul %40, %2, %cst_16 {dimension_numbers = #tpu.dot_dimension_numbers<[1], [0], [0], [1], [0, 0, 1, 1], [], []>} : vector<8x64xf32>, vector<64x64xf32>, vector<8x64xf32> -> vector<8x64xf32>
    %42 = vector.extract_strided_slice %29 {offsets = [16, 0], sizes = [8, 64], strides = [1, 1]} : vector<64x64xf32> to vector<8x64xf32>
    %43 = arith.addf %41, %42 : vector<8x64xf32>
    %44 = math.tanh %43 : vector<8x64xf32>
    %cst_17 = arith.constant dense<0.000000e+00> : vector<8x64xf32>
    %45 = tpu.matmul %44, %2, %cst_17 {dimension_numbers = #tpu.dot_dimension_numbers<[1], [0], [0], [1], [0, 0, 1, 1], [], []>} : vector<8x64xf32>, vector<64x64xf32>, vector<8x64xf32> -> vector<8x64xf32>
    %46 = vector.extract_strided_slice %29 {offsets = [24, 0], sizes = [8, 64], strides = [1, 1]} : vector<64x64xf32> to vector<8x64xf32>
    %47 = arith.addf %45, %46 : vector<8x64xf32>
    %48 = math.tanh %47 : vector<8x64xf32>
    %cst_18 = arith.constant dense<0.000000e+00> : vector<8x64xf32>
    %49 = tpu.matmul %48, %2, %cst_18 {dimension_numbers = #tpu.dot_dimension_numbers<[1], [0], [0], [1], [0, 0, 1, 1], [], []>} : vector<8x64xf32>, vector<64x64xf32>, vector<8x64xf32> -> vector<8x64xf32>
    %50 = vector.extract_strided_slice %29 {offsets = [32, 0], sizes = [8, 64], strides = [1, 1]} : vector<64x64xf32> to vector<8x64xf32>
    %51 = arith.addf %49, %50 : vector<8x64xf32>
    %52 = math.tanh %51 : vector<8x64xf32>
    %cst_19 = arith.constant dense<0.000000e+00> : vector<8x64xf32>
    %53 = tpu.matmul %52, %2, %cst_19 {dimension_numbers = #tpu.dot_dimension_numbers<[1], [0], [0], [1], [0, 0, 1, 1], [], []>} : vector<8x64xf32>, vector<64x64xf32>, vector<8x64xf32> -> vector<8x64xf32>
    %54 = vector.extract_strided_slice %29 {offsets = [40, 0], sizes = [8, 64], strides = [1, 1]} : vector<64x64xf32> to vector<8x64xf32>
    %55 = arith.addf %53, %54 : vector<8x64xf32>
    %56 = math.tanh %55 : vector<8x64xf32>
    %cst_20 = arith.constant dense<0.000000e+00> : vector<8x64xf32>
    %57 = tpu.matmul %56, %2, %cst_20 {dimension_numbers = #tpu.dot_dimension_numbers<[1], [0], [0], [1], [0, 0, 1, 1], [], []>} : vector<8x64xf32>, vector<64x64xf32>, vector<8x64xf32> -> vector<8x64xf32>
    %58 = vector.extract_strided_slice %29 {offsets = [48, 0], sizes = [8, 64], strides = [1, 1]} : vector<64x64xf32> to vector<8x64xf32>
    %59 = arith.addf %57, %58 : vector<8x64xf32>
    %60 = math.tanh %59 : vector<8x64xf32>
    %cst_21 = arith.constant dense<0.000000e+00> : vector<8x64xf32>
    %61 = tpu.matmul %60, %2, %cst_21 {dimension_numbers = #tpu.dot_dimension_numbers<[1], [0], [0], [1], [0, 0, 1, 1], [], []>} : vector<8x64xf32>, vector<64x64xf32>, vector<8x64xf32> -> vector<8x64xf32>
    %62 = vector.extract_strided_slice %29 {offsets = [56, 0], sizes = [8, 64], strides = [1, 1]} : vector<64x64xf32> to vector<8x64xf32>
    %63 = arith.addf %61, %62 : vector<8x64xf32>
    %64 = math.tanh %63 : vector<8x64xf32>
    %cst_22 = arith.constant dense<0.000000e+00> : vector<8x64xf32>
    %65 = tpu.matmul %64, %2, %cst_22 {dimension_numbers = #tpu.dot_dimension_numbers<[1], [0], [0], [1], [0, 0, 1, 1], [], []>} : vector<8x64xf32>, vector<64x64xf32>, vector<8x64xf32> -> vector<8x64xf32>
    %66 = vector.extract_strided_slice %29 {offsets = [0, 0], sizes = [8, 64], strides = [1, 1]} : vector<64x64xf32> to vector<8x64xf32>
    %67 = arith.addf %65, %66 : vector<8x64xf32>
    %68 = math.tanh %67 : vector<8x64xf32>
    %69 = tpu.concatenate %40, %44, %48, %52, %56, %60, %64, %68 in 0 : vector<8x64xf32>, vector<8x64xf32>, vector<8x64xf32>, vector<8x64xf32>, vector<8x64xf32>, vector<8x64xf32>, vector<8x64xf32>, vector<8x64xf32> -> vector<64x64xf32>
    %cst_23 = arith.constant dense<0.000000e+00> : vector<64x128xf32>
    %70 = tpu.matmul %69, %3, %cst_23 {dimension_numbers = #tpu.dot_dimension_numbers<[1], [0], [0], [1], [0, 0, 1, 1], [], []>} : vector<64x64xf32>, vector<64x128xf32>, vector<64x128xf32> -> vector<64x128xf32>
    %71 = vector.broadcast %5 : vector<1x128xf32> to vector<64x128xf32>
    %72 = arith.addf %70, %71 : vector<64x128xf32>
    %c0_24 = arith.constant 0 : index
    %c0_25 = arith.constant 0 : index
    %73 = vector.load %arg2[%c0_24, %c0_25] : memref<64x128xf32, #tpu.memory_space<vmem>>, vector<64x128xf32>
    tpu.vector_store %arg2[%c0_24, %c0_25], %72 {strides = array<i32>} : memref<64x128xf32, #tpu.memory_space<vmem>>, vector<64x128xf32>,
    return
  }
}

</mosaic_0001>

<bundles_post_ra>
// kernel: torch_model_forward.1
= control target key start
LH: loop header
LB: loop body
LE: loop exit
PB: predicated region body
PF: predicated region fallthrough
CT: control target
= control target key end

     0   :  { %vm39_vm0 = vcmask 261120   ;;  %v1660_v3 = vmov 0   ;;  %v96_v24 = vlaneseq  ;;  %vm146_vm1 = vcmask 195584   ;;  %s1987_s1 = inlined_call_operand.vmem [shape: f32[192,128], index: 1, kind: input, shape index: {}]   ;;  %s1988_s0 = inlined_call_operand.vmem [shape: s32[64,1], index: 0, kind: input, shape index: {}]   ;;  %s1989_s2 = inlined_call_operand.vmem [shape: f32[64,128], index: 2, kind: output, shape index: {}]  }
   0x1   :  { %v1682_v0 = vld [vmem:[%s1987_s1 + $0x10] sm:$0xff]  ;;  %v1687_v1 = vld [vmem:[%s1987_s1] sm:$0xff]  ;;  %v1692_v2 = vld [vmem:[%s1987_s1 + $0x8] sm:$0xff]  ;;  %1628 = vset.pattern.permute.xlu1 %v1660_v3  ;;  %1629 = vset.pattern.permute.xlu0 %v1660_v3  ;;  %v1661_v30 = vmov 0.0  }
   0x2   :  { %v38_v4 = vmul.f32 %v1682_v0, %v1682_v0  ;;  %v36_v5 = vmul.f32 %v1687_v1, %v1687_v1  ;;  %v37_v6 = vmul.f32 %v1692_v2, %v1692_v2  ;;  %v88_v10 = vld [vmem:[%s1988_s0] sm:$0xff]  ;;  %v90_v11 = vld [vmem:[%s1988_s0 + $0x10] sm:$0xff]  ;;  %v91_v12 = vld [vmem:[%s1988_s0 + $0x18] sm:$0xff]  ;;  %v1739_v27 = vand.u32 127, %v96_v24 }
   0x3   :  { %v89_v13 = vld [vmem:[%s1988_s0 + $0x8] sm:$0xff]  ;;  %v92_v14 = vld [vmem:[%s1988_s0 + $0x20] sm:$0xff]  ;;  %v94_v16 = vld [vmem:[%s1988_s0 + $0x30] sm:$0xff] }
   0x4   :  { %v46_v7 = vsel %vm39_vm0, %v38_v4, 0.0  ;;  %v40_v8 = vsel %vm39_vm0, %v36_v5, 0.0  ;;  %v43_v9 = vsel %vm39_vm0, %v37_v6, 0.0  ;;  %v93_v15 = vld [vmem:[%s1988_s0 + $0x28] sm:$0xff]  ;;  %v95_v17 = vld [vmem:[%s1988_s0 + $0x38] sm:$0xff]  ;;  %v15_v19 = vld [vmem:[%s1987_s1 + $0x20] sm:$0xff] }
   0x5   :  { %47 = vadd.xlane.f32.xlu1 %v46_v7  ;;  %41 = vadd.xlane.f32.xlu0 %v40_v8  ;;  %v14_v18 = vld [vmem:[%s1987_s1 + $0x18] sm:$0xff]  ;;  %v16_v20 = vld [vmem:[%s1987_s1 + $0x28] sm:$0xff]  ;;  %v17_v22 = vld [vmem:[%s1987_s1 + $0x30] sm:$0xff] }
   0x6   :  { %v1504_v21 = vpack.c.bf16 %v15_v19, %v14_v18  ;;  %v1508_v23 = vpack.c.bf16 %v17_v22, %v16_v20  ;;  %v18_v19 = vld [vmem:[%s1987_s1 + $0x38] sm:$0xff]  ;;  %v19_v20 = vld [vmem:[%s1987_s1 + $0x40] sm:$0xff]  ;;  %v20_v22 = vld [vmem:[%s1987_s1 + $0x48] sm:$0xff] }
   0x8   :  { %1505 = vmatprep.subr.bf16.mxu1 %v1504_v21 }
   0x9   :  { %44 = vadd.xlane.f32.xlu0 %v43_v9  ;;  %1507 = vmatpush3.bf16.msra.mxu1 %v1504_v21  ;;  %v1784_v21 = vpack.c.bf16 %v19_v20, %v18_v19  ;;  %v32_v19 = vld [vmem:[%s1987_s1 + $0xa8] sm:$0xff]  ;;  %v33_v20 = vld [vmem:[%s1987_s1 + $0xb0] sm:$0xff] }
   0xa   :  { %1509 = vmatprep.subr.bf16.mxu1 %v1508_v23 }
   0xd   :  { %1511 = vmatpush3.bf16.msra.mxu1 %v1508_v23  ;;  %v21_v23 = vld [vmem:[%s1987_s1 + $0x50] sm:$0xff] }
   0xe   :  { %v1796_v24 = vpack.c.bf16 %v21_v23, %v20_v22 }
  0x16   :  { %99 = vperm.xlu1 %1628, %v88_v10   ;;  %v1662_v10 = vmov 0.0|0.0  }
  0x17   :  { %1512 = vmatprep.subr.bf16.mxu1 %v1662_v10 }
  0x1a   :  { %105 = vperm.xlu1 %1628, %v90_v11  }
  0x1e   :  { %108 = vperm.xlu1 %1628, %v91_v12  }
  0x1f   :  { %102 = vperm.xlu0 %1629, %v89_v13  }
  0x22   :  { %111 = vperm.xlu1 %1628, %v92_v14  }
  0x26   :  { %114 = vperm.xlu1 %1628, %v93_v15  }
  0x2a   :  { %117 = vperm.xlu1 %1628, %v94_v16  }
  0x2e   :  { %120 = vperm.xlu1 %1628, %v95_v17  }
  0x92   :  { %v48_v25 = vpop.xlane.xlu1 %47  ;;  %v42_v26 = vpop.xlane.xlu0 %41 }
  0x93   :  { %1630 = vrsqrt.f32 %v48_v25  ;;  %vm65_vm3 = vcmp.eq.f32.partialorder %v48_v25, inf  ;;  %v68_v36 = vand.u32 2147483648, %v48_v25  ;;  %vm51_vm4 = vcmp.eq.f32.partialorder %v42_v26, inf }
  0x94   :  { %1632 = vrsqrt.f32 %v42_v26  ;;  %v54_v37 = vand.u32 2147483648, %v42_v26  ;;  %vm67_vm5 = vcmp.eq.f32.partialorder %v48_v25, 0.0  ;;  %vm53_vm6 = vcmp.eq.f32.partialorder %v42_v26, 0.0 }
  0x96   :  { %v45_v28 = vpop.xlane.xlu0 %44  ;;  %v100_v29 = vpop.permute.xlu1 %99 }
  0x97   :  { %1634 = vrsqrt.f32 %v45_v28  ;;  %vm122_vm2 = vcmp.eq.s32.totalorder %v100_v29, %v1739_v27  ;;  %vm58_vm7 = vcmp.eq.f32.partialorder %v45_v28, inf  ;;  %v61_v44 = vand.u32 2147483648, %v45_v28  ;;  %v24_v29 = vld [vmem:[%s1987_s1 + $0x68] sm:$0xff] }
  0x98   :  { %v1129_v31 = vsel %vm122_vm2, 1.0, %v1661_v30  ;;  %vm60_vm8 = vcmp.eq.f32.partialorder %v45_v28, 0.0 }
  0x99   :  { %1288 = vmatprep.mubr.msk.f32.mxu0 %vm146_vm1, %v1129_v31  ;;  %v25_v31 = vld [vmem:[%s1987_s1 + $0x70] sm:$0xff] }
  0x9a   :  { %v106_v48 = vpop.permute.xlu1 %105 }
  0x9b   :  { %vm124_vm13 = vcmp.eq.s32.totalorder %v106_v48, %v1739_v27 }
  0x9d   :  { %v1631_v32 = vpop.eup %1630 }
  0x9e   :  { %v1633_v33 = vpop.eup %1632  ;;  %v64_v34 = vmul.f32 %v1631_v32, %v48_v25  ;;  %v109_v51 = vpop.permute.xlu1 %108  ;;  %v1820_v32 = vpack.c.bf16 %v25_v31, %v24_v29 }
  0x9f   :  { %v50_v35 = vmul.f32 %v1633_v33, %v42_v26  ;;  %v103_v61 = vpop.permute.xlu0 %102  ;;  %vm125_vm14 = vcmp.eq.s32.totalorder %v109_v51, %v1739_v27  ;;  %v1145_v33 = vld [vmem:[%s1987_s1 + $0xb8] ss:$0 sm:$0xff] }
  0xa0   :  { %v66_v38 = vsel %vm65_vm3, %v48_v25, %v64_v34  ;;  %vm123_vm12 = vcmp.eq.s32.totalorder %v103_v61, %v1739_v27  ;;  %v22_v25 = vld [vmem:[%s1987_s1 + $0x58] sm:$0xff] }
  0xa1   :  { %v1635_v39 = vpop.eup %1634  ;;  %v52_v40 = vsel %vm51_vm4, %v42_v26, %v50_v35  ;;  %v69_v41 = vsel %vm67_vm5, %v68_v36, %v66_v38  ;;  %v1130_v4 = vsel %vm123_vm12, 1.0, %v1661_v30  ;;  %v23_v26 = vld [vmem:[%s1987_s1 + $0x60] sm:$0xff]  ;;  %vm412_vm5 = vcmask 523264  }
  0xa2   :  { %v57_v42 = vmul.f32 %v1635_v39, %v45_v28  ;;  %v55_v43 = vsel %vm53_vm6, %v54_v37, %v52_v40  ;;  %v75_v46 = vadd.f32 1e-07, %v69_v41  ;;  %v112_v54 = vpop.permute.xlu1 %111  ;;  %vm72_vm11 = vcmp.gt.f32.partialorder %v69_v41, 1.0 }
  0xa3   :  { %v73_v45 = vadd.f32 1e-07, %v55_v43  ;;  %vm70_vm9 = vcmp.gt.f32.partialorder %v55_v43, 1.0  ;;  %vm126_vm15 = vcmp.eq.s32.totalorder %v112_v54, %v1739_v27 }
  0xa4   :  { %v59_v47 = vsel %vm58_vm7, %v45_v28, %v57_v42  ;;  %v1808_v28 = vpack.c.bf16 %v23_v26, %v22_v25  ;;  %v1162_v26 = vld [vmem:[%s1987_s1 + $0xb9] ss:$0 sm:$0xff] }
  0xa5   :  { %v62_v49 = vsel %vm60_vm8, %v61_v44, %v59_v47  ;;  %1636 = vrcp.f32 %v73_v45 }
  0xa6   :  { %v74_v50 = vadd.f32 1e-07, %v62_v49  ;;  %1638 = vrcp.f32 %v75_v46  ;;  %vm71_vm10 = vcmp.gt.f32.partialorder %v62_v49, 1.0  ;;  %v115_v63 = vpop.permute.xlu1 %114 }
  0xa7   :  { %vm127_vm2 = vcmp.eq.s32.totalorder %v115_v63, %v1739_v27 }
  0xa8   :  { %1640 = vrcp.f32 %v74_v50  ;;  %v1134_v7 = vsel %vm127_vm2, 1.0, %v1661_v30 }
  0xaa   :  { %v118_v5 = vpop.permute.xlu1 %117 }
  0xab   :  { %vm128_vm3 = vcmp.eq.s32.totalorder %v118_v5, %v1739_v27 }
  0xac   :  { %v1135_v8 = vsel %vm128_vm3, 1.0, %v1661_v30 }
  0xae   :  { %v121_v6 = vpop.permute.xlu1 %120 }
  0xaf   :  { %v1637_v52 = vpop.eup %1636  ;;  %vm129_vm4 = vcmp.eq.s32.totalorder %v121_v6, %v1739_v27 }
  0xb0   :  { %v1639_v53 = vpop.eup %1638  ;;  %v82_v55 = vsel %vm70_vm9, %v1637_v52, 1.0  ;;  %v1136_v9 = vsel %vm129_vm4, 1.0, %v1661_v30 }
  0xb1   :  { %v85_v58 = vmul.f32 %v82_v55, %v1687_v1  ;;  %v84_v60 = vsel %vm72_vm11, %v1639_v53, 1.0  ;;  %v1131_v1 = vsel %vm124_vm13, 1.0, %v1661_v30 }
  0xb2   :  { %v1641_v56 = vpop.eup %1640  ;;  %v87_v3 = vmul.f32 %v84_v60, %v1682_v0  ;;  %v1132_v0 = vsel %vm125_vm14, 1.0, %v1661_v30 }
  0xb3   :  { %v83_v57 = vsel %vm71_vm10, %v1641_v56, 1.0 }
  0xb4   :  { %v86_v59 = vmul.f32 %v83_v57, %v1692_v2  ;;  %v1133_v2 = vsel %vm126_vm15, 1.0, %v1661_v30 }
  0xb6   :  { %v1500_v62 = vpack.c.bf16 %v86_v59, %v85_v58 }
  0xb8   :  { %1501 = vmatprep.subr.bf16.mxu0 %v1500_v62 }
  0xb9   :  { %1503 = vmatpush3.bf16.msra.mxu0 %v1500_v62 }
  0xba   :  { %1286 = vmatprep.subr.mxu0 %v87_v3 }
  0xbd   :  { %1287 = vmatpush3.msra.mxu0 %v87_v3 }
  0xbe   :  { %1289 = vmatmul.mubr.msk.f32.vlgmr.msra.gmra.mrb[0].mxu0 %vm146_vm1, %v1130_v4  ;;  %1536 = vmatprep.subr.bf16.mxu0 %v1662_v10 }
  0xbf   :  { %1291 = vmatprep.mubr.msk.f32.mxu0 %vm146_vm1, %v1131_v1  ;;  %1538 = vmatpush3.bf16.msra.mxu0 %v1784_v21 }
  0xc0   :  { %1539 = vmatprep.subr.bf16.mxu0 %v1662_v10 }
  0xc2   :  { %1292 = vmatmul.mubr.msk.f32.gmra.mrb[2].mxu0 %vm146_vm1, %v1132_v0 }
  0xc3   :  { %1294 = vmatprep.mubr.msk.f32.mxu0 %vm146_vm1, %v1133_v2  ;;  %1541 = vmatpush3.bf16.msra.mxu0 %v1796_v24 }
  0xc4   :  { %1542 = vmatprep.subr.bf16.mxu0 %v1662_v10 }
  0xc6   :  { %1295 = vmatmul.mubr.msk.f32.gmra.mrb[4].mxu0 %vm146_vm1, %v1134_v7  ;;  %v26_v7 = vld [vmem:[%s1987_s1 + $0x78] sm:$0xff] }
  0xc7   :  { %1297 = vmatprep.mubr.msk.f32.mxu0 %vm146_vm1, %v1135_v8  ;;  %1544 = vmatpush3.bf16.msra.mxu0 %v1808_v28 }
  0xc8   :  { %1545 = vmatprep.subr.bf16.mxu0 %v1662_v10 }
  0xca   :  { %1298 = vmatmul.mubr.msk.f32.gmra.mrb[6].mxu0 %vm146_vm1, %v1136_v9  ;;  %vm409_vm1 = vcmp.lt.s32.totalorder %v1739_v27, 32 }
  0xcb   :  { %1547 = vmatpush3.bf16.msra.mxu0 %v1820_v32 }
  0xcc   :  { %1560 = vmatprep.subr.bf16.mxu0 %v1662_v10 }
 0x191   :  { %v1290_v11 = vpop.f32.mrb[0].mxu0 }
 0x192   :  { %v237_v12 = vpop.f32.mrb[1].mxu0 }
 0x193   :  { %1308 = vmatprep.mubr.msk.f32.mxu1 %vm39_vm0, %v237_v12 }
 0x194   :  { %1309 = vmatmul.mubr.msk.f32.vlgmr.msra.gmra.mrb[0].mxu1 %vm39_vm0, %v1290_v11 }
 0x195   :  { %v1293_v13 = vpop.f32.mrb[2].mxu0  ;;  %1514 = vmatpush3.bf16.msra.mxu1 %v1784_v21 }
 0x196   :  { %v247_v14 = vpop.f32.mrb[3].mxu0  ;;  %1515 = vmatprep.subr.bf16.mxu1 %v1662_v10 }
 0x197   :  { %1311 = vmatprep.mubr.msk.f32.mxu1 %vm39_vm0, %v247_v14 }
 0x198   :  { %1312 = vmatmul.mubr.msk.f32.gmra.mrb[2].mxu1 %vm39_vm0, %v1293_v13  ;;  %v29_v13 = vld [vmem:[%s1987_s1 + $0x90] sm:$0xff] }
 0x199   :  { %v1296_v15 = vpop.f32.mrb[4].mxu0  ;;  %1517 = vmatpush3.bf16.msra.mxu1 %v1796_v24 }
 0x19a   :  { %v257_v16 = vpop.f32.mrb[5].mxu0  ;;  %1518 = vmatprep.subr.bf16.mxu1 %v1662_v10 }
 0x19b   :  { %1314 = vmatprep.mubr.msk.f32.mxu1 %vm39_vm0, %v257_v16  ;;  %v30_v16 = vld [vmem:[%s1987_s1 + $0x98] sm:$0xff] }
 0x19c   :  { %1315 = vmatmul.mubr.msk.f32.gmra.mrb[4].mxu1 %vm39_vm0, %v1296_v15 }
 0x19d   :  { %v1299_v17 = vpop.f32.mrb[6].mxu0  ;;  %1520 = vmatpush3.bf16.msra.mxu1 %v1808_v28 }
 0x19e   :  { %v267_v18 = vpop.f32.mrb[7].mxu0  ;;  %1521 = vmatprep.subr.bf16.mxu1 %v1662_v10 }
 0x19f   :  { %1317 = vmatprep.mubr.msk.f32.mxu1 %vm39_vm0, %v267_v18 }
 0x1a0   :  { %1318 = vmatmul.mubr.msk.f32.gmra.mrb[6].mxu1 %vm39_vm0, %v1299_v17  ;;  %vm1663_vm0 = vmmov 0   ;;  %v31_v17 = vld [vmem:[%s1987_s1 + $0xa0] sm:$0xff] }
 0x1a1   :  { %1523 = vmatpush3.bf16.msra.mxu1 %v1820_v32  ;;  %1336 = vmatprep.mubr.msk.f32.mxu1 %vm1663_vm0, %v1661_v30  ;;  %v1616_v18 = vpack.c.bf16 %v31_v17, %v30_v16 }
 0x1a2   :  { %1524 = vmatprep.subr.bf16.mxu1 %v1662_v10  ;;  %1374 = vmatprep.mubr.msk.f32.mxu0 %vm1663_vm0, %v1661_v30 }
 0x267   :  { %v1310_v34 = vpop.f32.mrb[0].mxu1 }
 0x268   :  { %v376_v35 = vadd.f32 %v1310_v34, %v1145_v33  ;;  %v370_v36 = vpop.f32.mrb[1].mxu1 }
 0x269   :  { %v1833_v37 = vadd.f32 %v1145_v33, %v370_v36 }
 0x26b   :  { %1642 = vtanh.f32 %v1833_v37  ;;  %v1313_v38 = vpop.f32.mrb[2].mxu1 }
 0x26c   :  { %v386_v39 = vadd.f32 %v1313_v38, %v1145_v33  ;;  %v380_v40 = vpop.f32.mrb[3].mxu1 }
 0x26d   :  { %v381_v41 = vadd.f32 %v1145_v33, %v380_v40 }
 0x26f   :  { %v1316_v42 = vpop.f32.mrb[4].mxu1 }
 0x270   :  { %v1836_v43 = vadd.f32 %v1316_v42, %v1145_v33  ;;  %v390_v44 = vpop.f32.mrb[5].mxu1 }
 0x271   :  { %v1838_v45 = vadd.f32 %v1145_v33, %v390_v44 }
 0x273   :  { %v1319_v46 = vpop.f32.mrb[6].mxu1 }
 0x274   :  { %v1841_v47 = vadd.f32 %v1319_v46, %v1145_v33  ;;  %v400_v48 = vpop.f32.mrb[7].mxu1 }
 0x275   :  { %v1643_v49 = vpop.eup %1642  ;;  %v1843_v50 = vadd.f32 %v1145_v33, %v400_v48 }
 0x276   :  { %v411_v51 = vsel %vm409_vm1, %v1643_v49, 0.0 }
 0x277   :  { %1337 = vmatmul.mubr.msk.f32.vlgmr.msra.gmra.mrb[8].mxu1 %vm412_vm5, %v411_v51 }
 0x278   :  { %1526 = vmatpush3.bf16.msra.mxu1 %v1784_v21  ;;  %1355 = vmatprep.mubr.msk.f32.mxu1 %vm1663_vm0, %v1661_v30 }
 0x279   :  { %1527 = vmatprep.subr.bf16.mxu1 %v1662_v10 }
 0x27c   :  { %1529 = vmatpush3.bf16.msra.mxu1 %v1796_v24 }
 0x27d   :  { %1530 = vmatprep.subr.bf16.mxu1 %v1662_v10 }
 0x280   :  { %1532 = vmatpush3.bf16.msra.mxu1 %v1808_v28 }
 0x281   :  { %1533 = vmatprep.subr.bf16.mxu1 %v1662_v10 }
 0x284   :  { %1535 = vmatpush3.bf16.msra.mxu1 %v1820_v32 }
 0x285   :  { %1548 = vmatprep.subr.bf16.mxu1 %v1662_v10 }
 0x34a   :  { %v482_v27 = vpop.f32.mrb[8].mxu1 }
 0x34b   :  { %v483_v52 = vadd.f32 %v482_v27, %v376_v35  ;;  %v1338_v53 = vpop.f32.mrb[9].mxu1 }
 0x34d   :  { %1644 = vtanh.f32 %v483_v52 }
 0x357   :  { %v1856_v54 = vpop.eup %1644 }
 0x358   :  { %1356 = vmatmul.mubr.msk.f32.vlgmr.msra.gmra.mrb[10].mxu1 %vm412_vm5, %v1856_v54 }
 0x359   :  { %1550 = vmatpush3.bf16.msra.mxu1 %v1784_v21  ;;  %1393 = vmatprep.mubr.msk.f32.mxu1 %vm1663_vm0, %v1661_v30 }
 0x35a   :  { %1551 = vmatprep.subr.bf16.mxu1 %v1662_v10 }
 0x35d   :  { %1553 = vmatpush3.bf16.msra.mxu1 %v1796_v24 }
 0x35e   :  { %1554 = vmatprep.subr.bf16.mxu1 %v1662_v10 }
 0x361   :  { %1556 = vmatpush3.bf16.msra.mxu1 %v1808_v28 }
 0x362   :  { %1557 = vmatprep.subr.bf16.mxu1 %v1662_v10 }
 0x365   :  { %1559 = vmatpush3.bf16.msra.mxu1 %v1820_v32 }
 0x366   :  { %1572 = vmatprep.subr.bf16.mxu1 %v1662_v10 }
 0x42b   :  { %v556_v55 = vpop.f32.mrb[10].mxu1 }
 0x42c   :  { %v557_v56 = vadd.f32 %v556_v55, %v381_v41  ;;  %v1357_v57 = vpop.f32.mrb[11].mxu1 }
 0x42e   :  { %1646 = vtanh.f32 %v557_v56 }
 0x438   :  { %v1870_v58 = vpop.eup %1646 }
 0x439   :  { %1375 = vmatmul.mubr.msk.f32.vlgmr.msra.gmra.mrb[8].mxu0 %vm412_vm5, %v1870_v58 }
 0x43a   :  { %1562 = vmatpush3.bf16.msra.mxu0 %v1784_v21  ;;  %1412 = vmatprep.mubr.msk.f32.mxu0 %vm1663_vm0, %v1661_v30 }
 0x43b   :  { %1563 = vmatprep.subr.bf16.mxu0 %v1662_v10 }
 0x43e   :  { %1565 = vmatpush3.bf16.msra.mxu0 %v1796_v24 }
 0x43f   :  { %1566 = vmatprep.subr.bf16.mxu0 %v1662_v10 }
 0x442   :  { %1568 = vmatpush3.bf16.msra.mxu0 %v1808_v28 }
 0x443   :  { %1569 = vmatprep.subr.bf16.mxu0 %v1662_v10 }
 0x446   :  { %1571 = vmatpush3.bf16.msra.mxu0 %v1820_v32 }
 0x447   :  { %1584 = vmatprep.subr.bf16.mxu0 %v1662_v10 }
 0x50c   :  { %v630_v59 = vpop.f32.mrb[8].mxu0 }
 0x50d   :  { %v631_v60 = vadd.f32 %v630_v59, %v386_v39  ;;  %v1376_v61 = vpop.f32.mrb[9].mxu0 }
 0x50f   :  { %1648 = vtanh.f32 %v631_v60 }
 0x519   :  { %v1884_v62 = vpop.eup %1648 }
 0x51a   :  { %1394 = vmatmul.mubr.msk.f32.vlgmr.msra.gmra.mrb[12].mxu1 %vm412_vm5, %v1884_v62 }
 0x51b   :  { %1574 = vmatpush3.bf16.msra.mxu1 %v1784_v21  ;;  %1431 = vmatprep.mubr.msk.f32.mxu1 %vm1663_vm0, %v1661_v30 }
 0x51c   :  { %1575 = vmatprep.subr.bf16.mxu1 %v1662_v10 }
 0x51f   :  { %1577 = vmatpush3.bf16.msra.mxu1 %v1796_v24 }
 0x520   :  { %1578 = vmatprep.subr.bf16.mxu1 %v1662_v10 }
 0x523   :  { %1580 = vmatpush3.bf16.msra.mxu1 %v1808_v28 }
 0x524   :  { %1581 = vmatprep.subr.bf16.mxu1 %v1662_v10 }
 0x527   :  { %1583 = vmatpush3.bf16.msra.mxu1 %v1820_v32 }
 0x528   :  { %1596 = vmatprep.subr.bf16.mxu1 %v1662_v10 }
 0x5ed   :  { %v704_v63 = vpop.f32.mrb[12].mxu1 }
 0x5ee   :  { %v705_v3 = vadd.f32 %v704_v63, %v1838_v45  ;;  %v1395_v4 = vpop.f32.mrb[13].mxu1 }
 0x5f0   :  { %1650 = vtanh.f32 %v705_v3 }
 0x5fa   :  { %v1651_v5 = vpop.eup %1650 }
 0x5fb   :  { %1413 = vmatmul.mubr.msk.f32.vlgmr.msra.gmra.mrb[10].mxu0 %vm412_vm5, %v1651_v5 }
 0x5fc   :  { %1586 = vmatpush3.bf16.msra.mxu0 %v1784_v21  ;;  %1450 = vmatprep.mubr.msk.f32.mxu0 %vm1663_vm0, %v1661_v30 }
 0x5fd   :  { %1587 = vmatprep.subr.bf16.mxu0 %v1662_v10 }
 0x600   :  { %1589 = vmatpush3.bf16.msra.mxu0 %v1796_v24 }
 0x601   :  { %1590 = vmatprep.subr.bf16.mxu0 %v1662_v10 }
 0x604   :  { %1592 = vmatpush3.bf16.msra.mxu0 %v1808_v28 }
 0x605   :  { %1593 = vmatprep.subr.bf16.mxu0 %v1662_v10 }
 0x608   :  { %1595 = vmatpush3.bf16.msra.mxu0 %v1820_v32 }
 0x6ce   :  { %v778_v1 = vpop.f32.mrb[10].mxu0 }
 0x6cf   :  { %v779_v0 = vadd.f32 %v778_v1, %v1836_v43  ;;  %v1414_v2 = vpop.f32.mrb[11].mxu0 }
 0x6d1   :  { %1652 = vtanh.f32 %v779_v0 }
 0x6db   :  { %v1653_v6 = vpop.eup %1652 }
 0x6dc   :  { %1432 = vmatmul.mubr.msk.f32.vlgmr.msra.gmra.mrb[14].mxu1 %vm412_vm5, %v1653_v6 }
 0x6dd   :  { %1598 = vmatpush3.bf16.msra.mxu1 %v1784_v21  ;;  %1469 = vmatprep.mubr.msk.f32.mxu1 %vm1663_vm0, %v1661_v30  ;;  %v27_v30 = vld [vmem:[%s1987_s1 + $0x80] sm:$0xff]  ;;  %v1620_v21 = vpack.c.bf16 %v33_v20, %v32_v19 }
 0x6de   :  { %1599 = vmatprep.subr.bf16.mxu1 %v1662_v10  ;;  %v1608_v8 = vpack.c.bf16 %v27_v30, %v26_v7 }
 0x6e0   :  { %1609 = vmatprep.subr.bf16.mxu0 %v1608_v8 }
 0x6e1   :  { %1601 = vmatpush3.bf16.msra.mxu1 %v1796_v24 }
 0x6e2   :  { %1602 = vmatprep.subr.bf16.mxu1 %v1662_v10 }
 0x6e5   :  { %1604 = vmatpush3.bf16.msra.mxu1 %v1808_v28 }
 0x6e6   :  { %1605 = vmatprep.subr.bf16.mxu1 %v1662_v10  ;;  %v28_v10 = vld [vmem:[%s1987_s1 + $0x88] sm:$0xff] }
 0x6e7   :  { %v1612_v14 = vpack.c.bf16 %v29_v13, %v28_v10 }
 0x6e9   :  { %1607 = vmatpush3.bf16.msra.mxu1 %v1820_v32 }
 0x7af   :  { %v852_v9 = vpop.f32.mrb[14].mxu1 }
 0x7b0   :  { %v853_v11 = vadd.f32 %v852_v9, %v1843_v50  ;;  %v1433_v12 = vpop.f32.mrb[15].mxu1 }
 0x7b2   :  { %1654 = vtanh.f32 %v853_v11 }
 0x7bc   :  { %v1655_v15 = vpop.eup %1654 }
 0x7bd   :  { %1451 = vmatmul.mubr.msk.f32.vlgmr.msra.gmra.mrb[12].mxu0 %vm412_vm5, %v1655_v15 }
 0x7be   :  { %1611 = vmatpush3.bf16.msra.mxu0 %v1608_v8  ;;  %1488 = vmatprep.mubr.msk.f32.mxu0 %vm412_vm5, %v1856_v54 }
 0x7bf   :  { %1613 = vmatprep.subr.bf16.mxu0 %v1612_v14 }
 0x7c2   :  { %1615 = vmatpush3.bf16.msra.mxu0 %v1612_v14 }
 0x7c3   :  { %1617 = vmatprep.subr.bf16.mxu0 %v1616_v18 }
 0x7c6   :  { %1619 = vmatpush3.bf16.msra.mxu0 %v1616_v18 }
 0x7c7   :  { %1621 = vmatprep.subr.bf16.mxu0 %v1620_v21 }
 0x7ca   :  { %1623 = vmatpush3.bf16.msra.mxu0 %v1620_v21 }
 0x7cd   :  { %1489 = vmatmul.mubr.msk.f32.vlgmr.msra.gmra.mrb[14].mxu0 %vm412_vm5, %v1870_v58 }
 0x7ce   :  { %1491 = vmatprep.mubr.msk.f32.mxu0 %vm412_vm5, %v1884_v62 }
 0x7d1   :  { %1492 = vmatmul.mubr.msk.f32.gmra.mrb[16].mxu0 %vm412_vm5, %v1651_v5 }
 0x7d2   :  { %1494 = vmatprep.mubr.msk.f32.mxu0 %vm412_vm5, %v1653_v6 }
 0x7d5   :  { %1495 = vmatmul.mubr.msk.f32.gmra.mrb[18].mxu0 %vm412_vm5, %v1655_v15 }
 0x890   :  { %v926_v22 = vpop.f32.mrb[12].mxu0 }
 0x891   :  { %v927_v23 = vadd.f32 %v926_v22, %v1841_v47  ;;  %v1452_v24 = vpop.f32.mrb[13].mxu0 }
 0x893   :  { %1656 = vtanh.f32 %v927_v23 }
 0x89d   :  { %v1657_v25 = vpop.eup %1656 }
 0x89e   :  { %1470 = vmatmul.mubr.msk.f32.vlgmr.msra.gmra.mrb[16].mxu1 %vm412_vm5, %v1657_v25  ;;  %1497 = vmatprep.mubr.msk.f32.mxu0 %vm412_vm5, %v1657_v25 }
 0x8a0   :  { %v1490_v28 = vpop.f32.mrb[14].mxu0 }
 0x8a1   :  { %v1084_v29 = vadd.f32 %v1490_v28, %v1162_v26  ;;  %v1078_v31 = vpop.f32.mrb[15].mxu0 }
 0x8a2   :  { %v1079_v32 = vadd.f32 %v1162_v26, %v1078_v31 }
 0x8a3   :  { %1118 = vst [vmem:[%s1989_s2 + $0x8] sm:$0xff] %v1084_v29 }
 0x8a4   :  { %1117 = vst [vmem:[%s1989_s2] sm:$0xff] %v1079_v32  ;;  %v1493_v33 = vpop.f32.mrb[16].mxu0 }
 0x8a5   :  { %v1094_v34 = vadd.f32 %v1493_v33, %v1162_v26  ;;  %v1088_v35 = vpop.f32.mrb[17].mxu0 }
 0x8a6   :  { %v1089_v36 = vadd.f32 %v1162_v26, %v1088_v35 }
 0x8a7   :  { %1120 = vst [vmem:[%s1989_s2 + $0x18] sm:$0xff] %v1094_v34 }
 0x8a8   :  { %1119 = vst [vmem:[%s1989_s2 + $0x10] sm:$0xff] %v1089_v36  ;;  %v1496_v38 = vpop.f32.mrb[18].mxu0 }
 0x8a9   :  { %v1104_v39 = vadd.f32 %v1496_v38, %v1162_v26  ;;  %v1098_v40 = vpop.f32.mrb[19].mxu0 }
 0x8aa   :  { %v1099_v41 = vadd.f32 %v1162_v26, %v1098_v40 }
 0x8ab   :  { %1122 = vst [vmem:[%s1989_s2 + $0x28] sm:$0xff] %v1104_v39 }
 0x8ac   :  { %1121 = vst [vmem:[%s1989_s2 + $0x20] sm:$0xff] %v1099_v41 }
 0x971   :  { %v1000_v42 = vpop.f32.mrb[16].mxu1 }
 0x972   :  { %v1001_v43 = vadd.f32 %v1000_v42, %v1833_v37  ;;  %v1471_v44 = vpop.f32.mrb[17].mxu1 }
 0x974   :  { %1658 = vtanh.f32 %v1001_v43 }
 0x97e   :  { %v1659_v45 = vpop.eup %1658 }
 0x97f   :  { %1498 = vmatmul.mubr.msk.f32.gmra.mrb[20].mxu0 %vm412_vm5, %v1659_v45 }
 0xa52   :  { %v1499_v46 = vpop.f32.mrb[20].mxu0 }
 0xa53   :  { %v1114_v47 = vadd.f32 %v1499_v46, %v1162_v26  ;;  %v1108_v48 = vpop.f32.mrb[21].mxu0 }
 0xa54   :  { %v1109_v49 = vadd.f32 %v1162_v26, %v1108_v48 }
 0xa55   :  { %1124 = vst [vmem:[%s1989_s2 + $0x38] sm:$0xff] %v1114_v47 }
 0xa56   :  { %1123 = vst [vmem:[%s1989_s2 + $0x30] sm:$0xff] %v1109_v49 }

</bundles_post_ra>
